<compile_context>
chip_gen: v5e
topology: v5e:2x2
jax: 0.10.0
libtpu: 0.0.40
codegen_flags: <defaults>
</compile_context>

<pallas_src>
import functools

import numpy as np
import jax
import jax.numpy as jnp
from jax import lax
from jax.experimental import pallas as pl
from jax.experimental.pallas import tpu as pltpu


_VMEM_LIMIT_BYTES = 48 * 1024 * 1024   # > default scoped limit, < v7x 64 MiB physical
_ROW_TILE_TARGET = 256                 # rows per tile (256-512 sweet spot per review)


def _pick_row_tile(n, target=_ROW_TILE_TARGET):
    """Largest row tile that is a multiple of 8, divides n and is <= target.
    Falls back to a single full-extent block (always a legal block shape)."""
    if n <= target:
        return n
    if n % 8 != 0:
        return n  # TODO(synk): odd N falls back to one big block (fine for moderate N)
    for cand in range(min(target, n) // 8 * 8, 7, -8):
        if n % cand == 0:
            return cand
    return n


def _l2_normalize(x, eps=1e-12):
    """F.normalize(x, dim=-1) with eps=1e-12."""
    x = x.astype(jnp.float32)
    nrm = jnp.sqrt(jnp.sum(x * x, axis=-1, keepdims=True))
    return x / jnp.maximum(nrm, eps)


def _pad_lanes(x, multiple=128):
    """Zero-pad the feature dim to a multiple of 128 (lane-dense MXU operand);
    padding does not change dot products or norms."""
    pad = (-x.shape[-1]) % multiple
    if pad:
        x = jnp.pad(x, ((0, 0), (0, pad)))
    return x


def _compiler_params(semantics):
    return pltpu.CompilerParams(dimension_semantics=semantics,
                                vmem_limit_bytes=_VMEM_LIMIT_BYTES)


# ----------------------------------------------------------------------------
# Kernel 1: row-mean-normalized pairwise Euclidean distance (row-tiled)
# ----------------------------------------------------------------------------
def _pairwise_norm_dist_kernel(xq_ref, xk_ref, sqk_ref, out_ref):
    xq = xq_ref[...]                                   # (TM, D) query rows
    xk = xk_ref[...]                                   # (N, D) all keys (resident)
    # A @ B^T on the MXU without forming a transpose operand.
    gram = lax.dot_general(xq, xk, (((1,), (1,)), ((), ())),
                           preferred_element_type=jnp.float32)
    sq_q = jnp.sum(xq * xq, axis=-1, keepdims=True)    # (TM, 1)
    d2 = jnp.maximum(sq_q + sqk_ref[...] - 2.0 * gram, 0.0)
    d = jnp.sqrt(d2)   # TODO(synk): diagonal sqrt(0) has inf grad if ever differentiated
    mean = jnp.mean(d, axis=-1, keepdims=True)         # full row present in tile
    out_ref[...] = d * pl.reciprocal(mean, approx=True)


def pairwise_norm_dist(x):
    """cdist(x, x) divided by its per-row mean (row-tiled Pallas kernel)."""
    x = _pad_lanes(x.astype(jnp.float32))
    n, d = x.shape
    sq = jnp.sum(x * x, axis=-1)[None, :]              # (1, N) key squared norms
    tm = _pick_row_tile(n)
    return pl.pallas_call(
        _pairwise_norm_dist_kernel,
        out_shape=jax.ShapeDtypeStruct((n, n), jnp.float32),
        grid=(n // tm,),
        in_specs=[pl.BlockSpec((tm, d), lambda i: (i, 0)),   # query row tile
                  pl.BlockSpec((n, d), lambda i: (0, 0)),    # all keys (resident)
                  pl.BlockSpec((1, n), lambda i: (0, 0))],   # key |x|^2 (resident)
        out_specs=pl.BlockSpec((tm, n), lambda i: (i, 0)),
        compiler_params=_compiler_params(("parallel",)),
    )(x, x, sq)


# ----------------------------------------------------------------------------
# Kernel 2: W_P = exp(-cdist(t, t)^2 / sigma) for L2-normalized t (row-tiled)
# ----------------------------------------------------------------------------
def _wp_kernel(tq_ref, tk_ref, sqk_ref, out_ref, *, inv_sigma):
    tq = tq_ref[...]
    tk = tk_ref[...]
    gram = lax.dot_general(tq, tk, (((1,), (1,)), ((), ())),
                           preferred_element_type=jnp.float32)
    sq_q = jnp.sum(tq * tq, axis=-1, keepdims=True)
    d2 = jnp.maximum(sq_q + sqk_ref[...] - 2.0 * gram, 0.0)
    out_ref[...] = jnp.exp(-d2 * inv_sigma)            # 1/sigma constant-folded


def affinity_wp(t_norm, *, sigma):
    t = _pad_lanes(t_norm.astype(jnp.float32))
    n, d = t.shape
    sq = jnp.sum(t * t, axis=-1)[None, :]
    tm = _pick_row_tile(n)
    return pl.pallas_call(
        functools.partial(_wp_kernel, inv_sigma=1.0 / float(sigma)),
        out_shape=jax.ShapeDtypeStruct((n, n), jnp.float32),
        grid=(n // tm,),
        in_specs=[pl.BlockSpec((tm, d), lambda i: (i, 0)),
                  pl.BlockSpec((n, d), lambda i: (0, 0)),
                  pl.BlockSpec((1, n), lambda i: (0, 0))],
        out_specs=pl.BlockSpec((tm, n), lambda i: (i, 0)),
        compiler_params=_compiler_params(("parallel",)),
    )(t, t, sq)


# ----------------------------------------------------------------------------
# Kernel 3: W_C_tilda[i,j] = [V[i,j]!=0] * (V @ V^T)[i,j] / rowsum(V)[i]
# (closed form of the python loop over indNonzero in RC_STML.forward), row-tiled
# ----------------------------------------------------------------------------
def _wc_tilda_kernel(vq_ref, vk_ref, out_ref):
    Vq = vq_ref[...]                                   # (TM, N)
    Vk = vk_ref[...]                                   # (N, N) resident
    vv = lax.dot_general(Vq, Vk, (((1,), (1,)), ((), ())),
                         preferred_element_type=jnp.float32)
    rowsum = jnp.sum(Vq, axis=-1, keepdims=True)
    inv = pl.reciprocal(jnp.maximum(rowsum, 1.0), approx=True)
    out_ref[...] = jnp.where(Vq != 0.0, vv * inv, 0.0)


def wc_tilda(V):
    n = V.shape[0]
    tm = _pick_row_tile(n)
    return pl.pallas_call(
        _wc_tilda_kernel,
        out_shape=jax.ShapeDtypeStruct((n, n), jnp.float32),
        grid=(n // tm,),
        in_specs=[pl.BlockSpec((tm, n), lambda i: (i, 0)),
                  pl.BlockSpec((n, n), lambda i: (0, 0))],
        out_specs=pl.BlockSpec((tm, n), lambda i: (i, 0)),
        compiler_params=_compiler_params(("parallel",)),
    )(V, V)


# ----------------------------------------------------------------------------
# Kernel 4 (fused 4+5): relaxed-contrastive losses for S_dist_f and S_dist_g
# plus KL(softmax(-S_g) || softmax(-S_f)), one row-tiled reduction pass.
# Outputs three scalars: (RC_f, RC_g, KL).
# ----------------------------------------------------------------------------
def _fused_loss_kernel(sf_ref, sg_ref, w_ref, out_ref, acc_ref, *, delta):
    tm, n = sf_ref.shape
    i = pl.program_id(0)

    @pl.when(i == 0)
    def _():
        acc_ref[0] = 0.0
        acc_ref[1] = 0.0
        acc_ref[2] = 0.0

    Sf = sf_ref[...]
    Sg = sg_ref[...]
    W = w_ref[...]

    # Off-diagonal mask for this row tile (rows offset by i * TM).
    row = lax.broadcasted_iota(jnp.int32, (tm, n), 0) + i * tm
    col = lax.broadcasted_iota(jnp.int32, (tm, n), 1)
    off = (row != col).astype(jnp.float32)
    pos_w = W * off
    neg_w = (1.0 - W) * off

    rc_f = jnp.sum(jnp.maximum(Sf, 0.0) ** 2 * pos_w
                   + jnp.maximum(delta - Sf, 0.0) ** 2 * neg_w)
    rc_g = jnp.sum(jnp.maximum(Sg, 0.0) ** 2 * pos_w
                   + jnp.maximum(delta - Sg, 0.0) ** 2 * neg_w)

    # KL( softmax(-Sg) || softmax(-Sf) ), rows complete within the tile.
    A = -Sf                                            # logits of q
    B = -Sg                                            # logits of p (detached target)
    A_sh = A - jnp.max(A, axis=-1, keepdims=True)
    log_q = A_sh - jnp.log(jnp.sum(jnp.exp(A_sh), axis=-1, keepdims=True))
    B_sh = B - jnp.max(B, axis=-1, keepdims=True)
    eB = jnp.exp(B_sh)                                 # reused for sum_b and p
    sum_b = jnp.sum(eB, axis=-1, keepdims=True)
    p = eB * pl.reciprocal(sum_b, approx=True)
    log_p = B_sh - jnp.log(sum_b)
    kl = jnp.sum(p * (log_p - log_q))

    acc_ref[0] += rc_f
    acc_ref[1] += rc_g
    acc_ref[2] += kl

    @pl.when(i == pl.num_programs(0) - 1)
    def _():
        denom = 1.0 / float(n * (n - 1))
        out_ref[0] = acc_ref[0] * denom
        out_ref[1] = acc_ref[1] * denom
        out_ref[2] = acc_ref[2] * (1.0 / float(n))


def fused_losses(S_dist_f, S_dist_g, W, *, delta):
    n = S_dist_f.shape[0]
    tm = _pick_row_tile(n)
    res = pl.pallas_call(
        functools.partial(_fused_loss_kernel, delta=float(delta)),
        out_shape=jax.ShapeDtypeStruct((3,), jnp.float32),
        grid=(n // tm,),
        in_specs=[pl.BlockSpec((tm, n), lambda i: (i, 0)),
                  pl.BlockSpec((tm, n), lambda i: (i, 0)),
                  pl.BlockSpec((tm, n), lambda i: (i, 0))],
        out_specs=pl.BlockSpec(memory_space=pltpu.MemorySpace.SMEM),
        scratch_shapes=[pltpu.SMEM((3,), jnp.float32)],
        compiler_params=_compiler_params(("arbitrary",)),   # sequential reduction
    )(S_dist_f, S_dist_g, W)
    return res[0], res[1], res[2]


# ----------------------------------------------------------------------------
# Teacher graph (no-grad part of RC_STML); depends only on (t_g, idx),
# so it is computed ONCE and shared by both RC terms.
# ----------------------------------------------------------------------------
def teacher_graph(t_emb, idx, *, sigma, topk):
    n = t_emb.shape[0]
    t = _l2_normalize(t_emb)                           # teacher is always normalized
    W_P = affinity_wp(t, sigma=sigma)                  # Pallas kernel

    same_id = idx[:, None] == idx[None, :]
    W_P_copy = jnp.where(same_id, 1.0, W_P)
    _, topk_index = lax.top_k(W_P_copy, topk)          # (N, topk)
    k_half = int(np.around(topk / 2))
    topk_half_index = topk_index[:, :k_half]

    cols = jnp.arange(n, dtype=topk_index.dtype)
    # Scatter-free W_NN: union of one-hots over the top-k columns.
    W_NN = jnp.any(topk_index[:, :, None] == cols[None, None, :],
                   axis=1).astype(jnp.float32)
    V = (((W_NN + W_NN.T) / 2.0) == 1.0).astype(jnp.float32)   # mutual NN graph

    W_C_tilda = wc_tilda(V)                            # Pallas kernel

    # Gather-free W_C_hat = mean_m W_C_tilda[topk_half_index[:, m], :]
    # expressed as a selection-matrix matmul on the MXU.
    Sel = jnp.mean((topk_half_index[:, :, None] == cols[None, None, :]
                    ).astype(jnp.float32), axis=1)     # (N, N)
    W_C_hat = jnp.dot(Sel, W_C_tilda, preferred_element_type=jnp.float32)

    W_C = (W_C_hat + W_C_hat.T) / 2.0
    return (W_P + W_C) / 2.0


# ----------------------------------------------------------------------------
# STML_loss forward
# ----------------------------------------------------------------------------
def stml_loss(s_f, s_g, t_g, idx, *, sigma, delta, view, disable_mu, topk):
    del view  # only used to derive batch_size in the reference; unused in math

    # Student relative distance matrices: computed ONCE each, shared by the two
    # RC terms and the KL term.
    sf = _l2_normalize(s_f) if disable_mu else s_f.astype(jnp.float32)
    sg = _l2_normalize(s_g) if disable_mu else s_g.astype(jnp.float32)
    S_dist_f = pairwise_norm_dist(sf)
    S_dist_g = pairwise_norm_dist(sg)

    # Teacher graph: computed ONCE.
    W = teacher_graph(t_g, idx, sigma=sigma, topk=topk)

    # Single fused reduction pass over (S_dist_f, S_dist_g, W).
    rc_f, rc_g, kl = fused_losses(S_dist_f, S_dist_g, W, delta=delta)
    loss_RC = (rc_f + rc_g) / 2.0
    loss_KL = kl
    return dict(RC=loss_RC, KL=loss_KL, loss=loss_RC + loss_KL)


if __name__ == "__main__":
    # Hyperparameters (match STML_loss.__init__ signature).
    sigma, delta, view, disable_mu, topk = 1.0, 1.0, 2, True, 4

    N, D = 8, 32
    key = jax.random.PRNGKey(0)
    k1, k2, k3 = jax.random.split(key, 3)
    s_f = jax.random.normal(k1, (N, D), jnp.float32)   # student feature embeddings
    s_g = jax.random.normal(k2, (N, D), jnp.float32)   # student global embeddings
    t_g = jax.random.normal(k3, (N, D), jnp.float32)   # teacher embeddings
    # view=2: two augmented views of 4 identities
    idx = jnp.array([0, 1, 2, 3, 0, 1, 2, 3], dtype=jnp.int32)

    loss_fn = jax.jit(functools.partial(
        stml_loss, sigma=sigma, delta=delta, view=view,
        disable_mu=disable_mu, topk=topk))
    out = jax.block_until_ready(loss_fn(s_f, s_g, t_g, idx))

    assert np.isfinite(float(out["RC"]))
    assert np.isfinite(float(out["KL"]))
    assert np.isfinite(float(out["loss"]))
    print("KERNEL_OK")
</pallas_src>

<mosaic_0001>
module attributes {stable_mosaic.version = 11 : i64} {
  func.func @_wp_kernel(%arg0: i32, %arg1: memref<8x128xf32, #tpu.memory_space<vmem>>, %arg2: memref<8x128xf32, #tpu.memory_space<vmem>>, %arg3: memref<1x8xf32, #tpu.memory_space<vmem>>, %arg4: memref<8x8xf32, #tpu.memory_space<vmem>>) attributes {dimension_semantics = [#tpu.dimension_semantics<parallel>], iteration_bounds = array<i64: 1>, scalar_prefetch = 0 : i64, scratch_operands = 0 : i64, tpu.core_type = #tpu.core_type<tc>, window_params = [{transform_indices = @transform_0, window_bounds = array<i64: 8, 128>}, {pipeline_mode = #tpu.pipeline_mode<synchronous>, transform_indices = @transform_1, window_bounds = array<i64: 8, 128>}, {pipeline_mode = #tpu.pipeline_mode<synchronous>, transform_indices = @transform_2, window_bounds = array<i64: 1, 8>}, {transform_indices = @transform_3, window_bounds = array<i64: 8, 8>}]} {
    %c0 = arith.constant 0 : index
    %c0_0 = arith.constant 0 : index
    %0 = vector.load %arg1[%c0, %c0_0] : memref<8x128xf32, #tpu.memory_space<vmem>>, vector<8x128xf32>
    %c0_1 = arith.constant 0 : index
    %c0_2 = arith.constant 0 : index
    %1 = vector.load %arg2[%c0_1, %c0_2] : memref<8x128xf32, #tpu.memory_space<vmem>>, vector<8x128xf32>
    %cst = arith.constant dense<0.000000e+00> : vector<8x8xf32>
    %2 = tpu.matmul %0, %1, %cst {dimension_numbers = #tpu.dot_dimension_numbers<[1], [1], [0], [0], [0, 0, 1, 0], [], []>} : vector<8x128xf32>, vector<8x128xf32>, vector<8x8xf32> -> vector<8x8xf32>
    %3 = arith.mulf %0, %0 : vector<8x128xf32>
    %cst_3 = arith.constant dense<0.000000e+00> : vector<8xf32>
    %4 = vector.multi_reduction <add>, %3, %cst_3 [1] : vector<8x128xf32> to vector<8xf32>
    %5 = vector.shape_cast %4 : vector<8xf32> to vector<8x1xf32>
    %c0_4 = arith.constant 0 : index
    %c0_5 = arith.constant 0 : index
    %6 = vector.load %arg3[%c0_4, %c0_5] : memref<1x8xf32, #tpu.memory_space<vmem>>, vector<1x8xf32>
    %7 = vector.broadcast %5 : vector<8x1xf32> to vector<8x8xf32>
    %8 = vector.broadcast %6 : vector<1x8xf32> to vector<8x8xf32>
    %9 = arith.addf %7, %8 : vector<8x8xf32>
    %cst_6 = arith.constant 2.000000e+00 : f32
    %10 = vector.broadcast %cst_6 : f32 to vector<8x8xf32>
    %11 = arith.mulf %10, %2 : vector<8x8xf32>
    %12 = arith.subf %9, %11 : vector<8x8xf32>
    %cst_7 = arith.constant 0.000000e+00 : f32
    %13 = vector.broadcast %cst_7 : f32 to vector<8x8xf32>
    %14 = arith.maximumf %12, %13 : vector<8x8xf32>
    %cst_8 = arith.constant 0.000000e+00 : f32
    %15 = vector.broadcast %cst_8 : f32 to vector<8x8xf32>
    %16 = arith.subf %15, %14 : vector<8x8xf32>
    %cst_9 = arith.constant 1.000000e+00 : f32
    %17 = vector.broadcast %cst_9 : f32 to vector<8x8xf32>
    %18 = arith.mulf %16, %17 : vector<8x8xf32>
    %19 = math.exp %18 : vector<8x8xf32>
    %c0_10 = arith.constant 0 : index
    %c0_11 = arith.constant 0 : index
    %20 = vector.load %arg4[%c0_10, %c0_11] : memref<8x8xf32, #tpu.memory_space<vmem>>, vector<8x8xf32>
    tpu.vector_store %arg4[%c0_10, %c0_11], %19 {strides = array<i32>} : memref<8x8xf32, #tpu.memory_space<vmem>>, vector<8x8xf32>,
    return
  }
  func.func @transform_0(%arg0: i32) -> (i32, i32) {
    %c0_i32 = arith.constant 0 : i32
    %c0_i32_0 = arith.constant 0 : i32
    return %arg0, %c0_i32 : i32, i32
  }
  func.func @transform_1(%arg0: i32) -> (i32, i32) {
    %c0_i32 = arith.constant 0 : i32
    %c0_i32_0 = arith.constant 0 : i32
    %c0_i32_1 = arith.constant 0 : i32
    return %c0_i32, %c0_i32_0 : i32, i32
  }
  func.func @transform_2(%arg0: i32) -> (i32, i32) {
    %c0_i32 = arith.constant 0 : i32
    %c0_i32_0 = arith.constant 0 : i32
    %c0_i32_1 = arith.constant 0 : i32
    return %c0_i32, %c0_i32_0 : i32, i32
  }
  func.func @transform_3(%arg0: i32) -> (i32, i32) {
    %c0_i32 = arith.constant 0 : i32
    %c0_i32_0 = arith.constant 0 : i32
    return %arg0, %c0_i32 : i32, i32
  }
}

module attributes {stable_mosaic.version = 11 : i64} {
  func.func @_wc_tilda_kernel(%arg0: i32, %arg1: memref<8x8xf32, #tpu.memory_space<vmem>>, %arg2: memref<8x8xf32, #tpu.memory_space<vmem>>, %arg3: memref<8x8xf32, #tpu.memory_space<vmem>>) attributes {dimension_semantics = [#tpu.dimension_semantics<parallel>], iteration_bounds = array<i64: 1>, scalar_prefetch = 0 : i64, scratch_operands = 0 : i64, tpu.core_type = #tpu.core_type<tc>, window_params = [{transform_indices = @transform_0, window_bounds = array<i64: 8, 8>}, {pipeline_mode = #tpu.pipeline_mode<synchronous>, transform_indices = @transform_1, window_bounds = array<i64: 8, 8>}, {transform_indices = @transform_2, window_bounds = array<i64: 8, 8>}]} {
    %c0 = arith.constant 0 : index
    %c0_0 = arith.constant 0 : index
    %0 = vector.load %arg1[%c0, %c0_0] : memref<8x8xf32, #tpu.memory_space<vmem>>, vector<8x8xf32>
    %c0_1 = arith.constant 0 : index
    %c0_2 = arith.constant 0 : index
    %1 = vector.load %arg2[%c0_1, %c0_2] : memref<8x8xf32, #tpu.memory_space<vmem>>, vector<8x8xf32>
    %cst = arith.constant dense<0.000000e+00> : vector<8x8xf32>
    %2 = tpu.matmul %0, %1, %cst {dimension_numbers = #tpu.dot_dimension_numbers<[1], [1], [0], [0], [0, 0, 1, 0], [], []>} : vector<8x8xf32>, vector<8x8xf32>, vector<8x8xf32> -> vector<8x8xf32>
    %cst_3 = arith.constant dense<0.000000e+00> : vector<8xf32>
    %3 = vector.multi_reduction <add>, %0, %cst_3 [1] : vector<8x8xf32> to vector<8xf32>
    %4 = vector.shape_cast %3 : vector<8xf32> to vector<8x1xf32>
    %cst_4 = arith.constant 1.000000e+00 : f32
    %5 = vector.broadcast %cst_4 : f32 to vector<8x1xf32>
    %6 = arith.maximumf %4, %5 : vector<8x1xf32>
    %7 = tpu.reciprocal %6 {approx = true} : vector<8x1xf32> -> vector<8x1xf32>
    %cst_5 = arith.constant 0.000000e+00 : f32
    %8 = vector.broadcast %cst_5 : f32 to vector<8x8xf32>
    %9 = arith.cmpf one, %0, %8 : vector<8x8xf32>
    %10 = vector.broadcast %7 : vector<8x1xf32> to vector<8x8xf32>
    %11 = arith.mulf %2, %10 : vector<8x8xf32>
    %cst_6 = arith.constant 0.000000e+00 : f32
    %12 = vector.broadcast %cst_6 : f32 to vector<8x8xf32>
    %13 = arith.select %9, %11, %12 : vector<8x8xi1>, vector<8x8xf32>
    %c0_7 = arith.constant 0 : index
    %c0_8 = arith.constant 0 : index
    %14 = vector.load %arg3[%c0_7, %c0_8] : memref<8x8xf32, #tpu.memory_space<vmem>>, vector<8x8xf32>
    tpu.vector_store %arg3[%c0_7, %c0_8], %13 {strides = array<i32>} : memref<8x8xf32, #tpu.memory_space<vmem>>, vector<8x8xf32>,
    return
  }
  func.func @transform_0(%arg0: i32) -> (i32, i32) {
    %c0_i32 = arith.constant 0 : i32
    %c0_i32_0 = arith.constant 0 : i32
    return %arg0, %c0_i32 : i32, i32
  }
  func.func @transform_1(%arg0: i32) -> (i32, i32) {
    %c0_i32 = arith.constant 0 : i32
    %c0_i32_0 = arith.constant 0 : i32
    %c0_i32_1 = arith.constant 0 : i32
    return %c0_i32, %c0_i32_0 : i32, i32
  }
  func.func @transform_2(%arg0: i32) -> (i32, i32) {
    %c0_i32 = arith.constant 0 : i32
    %c0_i32_0 = arith.constant 0 : i32
    return %arg0, %c0_i32 : i32, i32
  }
}

module attributes {stable_mosaic.version = 11 : i64} {
  func.func @_pairwise_norm_dist_kernel(%arg0: i32, %arg1: memref<8x128xf32, #tpu.memory_space<vmem>>, %arg2: memref<8x128xf32, #tpu.memory_space<vmem>>, %arg3: memref<1x8xf32, #tpu.memory_space<vmem>>, %arg4: memref<8x8xf32, #tpu.memory_space<vmem>>) attributes {dimension_semantics = [#tpu.dimension_semantics<parallel>], iteration_bounds = array<i64: 1>, scalar_prefetch = 0 : i64, scratch_operands = 0 : i64, tpu.core_type = #tpu.core_type<tc>, window_params = [{transform_indices = @transform_0, window_bounds = array<i64: 8, 128>}, {pipeline_mode = #tpu.pipeline_mode<synchronous>, transform_indices = @transform_1, window_bounds = array<i64: 8, 128>}, {pipeline_mode = #tpu.pipeline_mode<synchronous>, transform_indices = @transform_2, window_bounds = array<i64: 1, 8>}, {transform_indices = @transform_3, window_bounds = array<i64: 8, 8>}]} {
    %c0 = arith.constant 0 : index
    %c0_0 = arith.constant 0 : index
    %0 = vector.load %arg1[%c0, %c0_0] : memref<8x128xf32, #tpu.memory_space<vmem>>, vector<8x128xf32>
    %c0_1 = arith.constant 0 : index
    %c0_2 = arith.constant 0 : index
    %1 = vector.load %arg2[%c0_1, %c0_2] : memref<8x128xf32, #tpu.memory_space<vmem>>, vector<8x128xf32>
    %cst = arith.constant dense<0.000000e+00> : vector<8x8xf32>
    %2 = tpu.matmul %0, %1, %cst {dimension_numbers = #tpu.dot_dimension_numbers<[1], [1], [0], [0], [0, 0, 1, 0], [], []>} : vector<8x128xf32>, vector<8x128xf32>, vector<8x8xf32> -> vector<8x8xf32>
    %3 = arith.mulf %0, %0 : vector<8x128xf32>
    %cst_3 = arith.constant dense<0.000000e+00> : vector<8xf32>
    %4 = vector.multi_reduction <add>, %3, %cst_3 [1] : vector<8x128xf32> to vector<8xf32>
    %5 = vector.shape_cast %4 : vector<8xf32> to vector<8x1xf32>
    %c0_4 = arith.constant 0 : index
    %c0_5 = arith.constant 0 : index
    %6 = vector.load %arg3[%c0_4, %c0_5] : memref<1x8xf32, #tpu.memory_space<vmem>>, vector<1x8xf32>
    %7 = vector.broadcast %5 : vector<8x1xf32> to vector<8x8xf32>
    %8 = vector.broadcast %6 : vector<1x8xf32> to vector<8x8xf32>
    %9 = arith.addf %7, %8 : vector<8x8xf32>
    %cst_6 = arith.constant 2.000000e+00 : f32
    %10 = vector.broadcast %cst_6 : f32 to vector<8x8xf32>
    %11 = arith.mulf %10, %2 : vector<8x8xf32>
    %12 = arith.subf %9, %11 : vector<8x8xf32>
    %cst_7 = arith.constant 0.000000e+00 : f32
    %13 = vector.broadcast %cst_7 : f32 to vector<8x8xf32>
    %14 = arith.maximumf %12, %13 : vector<8x8xf32>
    %15 = math.sqrt %14 : vector<8x8xf32>
    %cst_8 = arith.constant dense<0.000000e+00> : vector<8xf32>
    %16 = vector.multi_reduction <add>, %15, %cst_8 [1] : vector<8x8xf32> to vector<8xf32>
    %17 = vector.shape_cast %16 : vector<8xf32> to vector<8x1xf32>
    %cst_9 = arith.constant 8.000000e+00 : f32
    %18 = vector.broadcast %cst_9 : f32 to vector<8x1xf32>
    %19 = arith.divf %17, %18 : vector<8x1xf32>
    %20 = tpu.reciprocal %19 {approx = true} : vector<8x1xf32> -> vector<8x1xf32>
    %21 = vector.broadcast %20 : vector<8x1xf32> to vector<8x8xf32>
    %22 = arith.mulf %15, %21 : vector<8x8xf32>
    %c0_10 = arith.constant 0 : index
    %c0_11 = arith.constant 0 : index
    %23 = vector.load %arg4[%c0_10, %c0_11] : memref<8x8xf32, #tpu.memory_space<vmem>>, vector<8x8xf32>
    tpu.vector_store %arg4[%c0_10, %c0_11], %22 {strides = array<i32>} : memref<8x8xf32, #tpu.memory_space<vmem>>, vector<8x8xf32>,
    return
  }
  func.func @transform_0(%arg0: i32) -> (i32, i32) {
    %c0_i32 = arith.constant 0 : i32
    %c0_i32_0 = arith.constant 0 : i32
    return %arg0, %c0_i32 : i32, i32
  }
  func.func @transform_1(%arg0: i32) -> (i32, i32) {
    %c0_i32 = arith.constant 0 : i32
    %c0_i32_0 = arith.constant 0 : i32
    %c0_i32_1 = arith.constant 0 : i32
    return %c0_i32, %c0_i32_0 : i32, i32
  }
  func.func @transform_2(%arg0: i32) -> (i32, i32) {
    %c0_i32 = arith.constant 0 : i32
    %c0_i32_0 = arith.constant 0 : i32
    %c0_i32_1 = arith.constant 0 : i32
    return %c0_i32, %c0_i32_0 : i32, i32
  }
  func.func @transform_3(%arg0: i32) -> (i32, i32) {
    %c0_i32 = arith.constant 0 : i32
    %c0_i32_0 = arith.constant 0 : i32
    return %arg0, %c0_i32 : i32, i32
  }
}

module attributes {stable_mosaic.version = 11 : i64} {
  func.func @_fused_loss_kernel(%arg0: i32, %arg1: memref<8x8xf32, #tpu.memory_space<vmem>>, %arg2: memref<8x8xf32, #tpu.memory_space<vmem>>, %arg3: memref<8x8xf32, #tpu.memory_space<vmem>>, %arg4: memref<3xf32, #tpu.memory_space<smem>>, %arg5: memref<3xf32, #tpu.memory_space<smem>>) attributes {dimension_semantics = [#tpu.dimension_semantics<arbitrary>], iteration_bounds = array<i64: 1>, scalar_prefetch = 0 : i64, scratch_operands = 1 : i64, tpu.core_type = #tpu.core_type<tc>, window_params = [{transform_indices = @transform_0, window_bounds = array<i64: 8, 8>}, {transform_indices = @transform_1, window_bounds = array<i64: 8, 8>}, {transform_indices = @transform_2, window_bounds = array<i64: 8, 8>}, {transform_indices = @transform_3, window_bounds = array<i64: 3>}]} {
    %c0_i32 = arith.constant 0 : i32
    %0 = arith.cmpi eq, %arg0, %c0_i32 : i32
    %1 = arith.extui %0 : i1 to i32
    %c0_i32_0 = arith.constant 0 : i32
    %2 = arith.cmpi ne, %1, %c0_i32_0 : i32
    scf.if %2 {
      %cst_27 = arith.constant 0.000000e+00 : f32
      %c0_28 = arith.constant 0 : index
      %93 = memref.load %arg5[%c0_28] : memref<3xf32, #tpu.memory_space<smem>>
      memref.store %cst_27, %arg5[%c0_28] : memref<3xf32, #tpu.memory_space<smem>>
      %cst_29 = arith.constant 0.000000e+00 : f32
      %c1_30 = arith.constant 1 : index
      %94 = memref.load %arg5[%c1_30] : memref<3xf32, #tpu.memory_space<smem>>
      memref.store %cst_29, %arg5[%c1_30] : memref<3xf32, #tpu.memory_space<smem>>
      %cst_31 = arith.constant 0.000000e+00 : f32
      %c2_32 = arith.constant 2 : index
      %95 = memref.load %arg5[%c2_32] : memref<3xf32, #tpu.memory_space<smem>>
      memref.store %cst_31, %arg5[%c2_32] : memref<3xf32, #tpu.memory_space<smem>>
    } else {
    }
    %c0 = arith.constant 0 : index
    %c0_1 = arith.constant 0 : index
    %3 = vector.load %arg1[%c0, %c0_1] : memref<8x8xf32, #tpu.memory_space<vmem>>, vector<8x8xf32>
    %c0_2 = arith.constant 0 : index
    %c0_3 = arith.constant 0 : index
    %4 = vector.load %arg2[%c0_2, %c0_3] : memref<8x8xf32, #tpu.memory_space<vmem>>, vector<8x8xf32>
    %c0_4 = arith.constant 0 : index
    %c0_5 = arith.constant 0 : index
    %5 = vector.load %arg3[%c0_4, %c0_5] : memref<8x8xf32, #tpu.memory_space<vmem>>, vector<8x8xf32>
    %6 = tpu.iota {dimensions = array<i32: 0>} : vector<8x8xi32>
    %c8_i32 = arith.constant 8 : i32
    %7 = arith.muli %arg0, %c8_i32 : i32
    %8 = vector.broadcast %7 : i32 to vector<8x8xi32>
    %9 = arith.addi %6, %8 : vector<8x8xi32>
    %10 = tpu.iota {dimensions = array<i32: 1>} : vector<8x8xi32>
    %11 = arith.cmpi ne, %9, %10 : vector<8x8xi32>
    %12 = arith.extui %11 : vector<8x8xi1> to vector<8x8xi32>
    %13 = arith.sitofp %12 : vector<8x8xi32> to vector<8x8xf32>
    %14 = arith.mulf %5, %13 : vector<8x8xf32>
    %cst = arith.constant 1.000000e+00 : f32
    %15 = vector.broadcast %cst : f32 to vector<8x8xf32>
    %16 = arith.subf %15, %5 : vector<8x8xf32>
    %17 = arith.mulf %16, %13 : vector<8x8xf32>
    %cst_6 = arith.constant 0.000000e+00 : f32
    %18 = vector.broadcast %cst_6 : f32 to vector<8x8xf32>
    %19 = arith.maximumf %3, %18 : vector<8x8xf32>
    %20 = arith.mulf %19, %19 : vector<8x8xf32>
    %21 = arith.mulf %20, %14 : vector<8x8xf32>
    %cst_7 = arith.constant 1.000000e+00 : f32
    %22 = vector.broadcast %cst_7 : f32 to vector<8x8xf32>
    %23 = arith.subf %22, %3 : vector<8x8xf32>
    %cst_8 = arith.constant 0.000000e+00 : f32
    %24 = vector.broadcast %cst_8 : f32 to vector<8x8xf32>
    %25 = arith.maximumf %23, %24 : vector<8x8xf32>
    %26 = arith.mulf %25, %25 : vector<8x8xf32>
    %27 = arith.mulf %26, %17 : vector<8x8xf32>
    %28 = arith.addf %21, %27 : vector<8x8xf32>
    %29 = vector.shape_cast %28 : vector<8x8xf32> to vector<1x8x8xf32>
    %cst_9 = arith.constant dense<0.000000e+00> : vector<1xf32>
    %30 = vector.multi_reduction <add>, %29, %cst_9 [1, 2] : vector<1x8x8xf32> to vector<1xf32>
    %31 = vector.shape_cast %30 : vector<1xf32> to vector<1x1x1xf32>
    %32 = vector.extract %31[0, 0, 0] : f32 from vector<1x1x1xf32>
    %cst_10 = arith.constant 0.000000e+00 : f32
    %33 = vector.broadcast %cst_10 : f32 to vector<8x8xf32>
    %34 = arith.maximumf %4, %33 : vector<8x8xf32>
    %35 = arith.mulf %34, %34 : vector<8x8xf32>
    %36 = arith.mulf %35, %14 : vector<8x8xf32>
    %cst_11 = arith.constant 1.000000e+00 : f32
    %37 = vector.broadcast %cst_11 : f32 to vector<8x8xf32>
    %38 = arith.subf %37, %4 : vector<8x8xf32>
    %cst_12 = arith.constant 0.000000e+00 : f32
    %39 = vector.broadcast %cst_12 : f32 to vector<8x8xf32>
    %40 = arith.maximumf %38, %39 : vector<8x8xf32>
    %41 = arith.mulf %40, %40 : vector<8x8xf32>
    %42 = arith.mulf %41, %17 : vector<8x8xf32>
    %43 = arith.addf %36, %42 : vector<8x8xf32>
    %44 = vector.shape_cast %43 : vector<8x8xf32> to vector<1x8x8xf32>
    %cst_13 = arith.constant dense<0.000000e+00> : vector<1xf32>
    %45 = vector.multi_reduction <add>, %44, %cst_13 [1, 2] : vector<1x8x8xf32> to vector<1xf32>
    %46 = vector.shape_cast %45 : vector<1xf32> to vector<1x1x1xf32>
    %47 = vector.extract %46[0, 0, 0] : f32 from vector<1x1x1xf32>
    %cst_14 = arith.constant 0.000000e+00 : f32
    %48 = vector.broadcast %cst_14 : f32 to vector<8x8xf32>
    %49 = arith.subf %48, %3 : vector<8x8xf32>
    %cst_15 = arith.constant 0.000000e+00 : f32
    %50 = vector.broadcast %cst_15 : f32 to vector<8x8xf32>
    %51 = arith.subf %50, %4 : vector<8x8xf32>
    %cst_16 = arith.constant dense<0xFF800000> : vector<8xf32>
    %52 = vector.multi_reduction <maximumf>, %49, %cst_16 [1] : vector<8x8xf32> to vector<8xf32>
    %53 = vector.shape_cast %52 : vector<8xf32> to vector<8x1xf32>
    %54 = vector.broadcast %53 : vector<8x1xf32> to vector<8x8xf32>
    %55 = arith.subf %49, %54 : vector<8x8xf32>
    %56 = math.exp %55 : vector<8x8xf32>
    %cst_17 = arith.constant dense<0.000000e+00> : vector<8xf32>
    %57 = vector.multi_reduction <add>, %56, %cst_17 [1] : vector<8x8xf32> to vector<8xf32>
    %58 = vector.shape_cast %57 : vector<8xf32> to vector<8x1xf32>
    %59 = math.log %58 : vector<8x1xf32>
    %60 = vector.broadcast %59 : vector<8x1xf32> to vector<8x8xf32>
    %61 = arith.subf %55, %60 : vector<8x8xf32>
    %cst_18 = arith.constant dense<0xFF800000> : vector<8xf32>
    %62 = vector.multi_reduction <maximumf>, %51, %cst_18 [1] : vector<8x8xf32> to vector<8xf32>
    %63 = vector.shape_cast %62 : vector<8xf32> to vector<8x1xf32>
    %64 = vector.broadcast %63 : vector<8x1xf32> to vector<8x8xf32>
    %65 = arith.subf %51, %64 : vector<8x8xf32>
    %66 = math.exp %65 : vector<8x8xf32>
    %cst_19 = arith.constant dense<0.000000e+00> : vector<8xf32>
    %67 = vector.multi_reduction <add>, %66, %cst_19 [1] : vector<8x8xf32> to vector<8xf32>
    %68 = vector.shape_cast %67 : vector<8xf32> to vector<8x1xf32>
    %69 = tpu.reciprocal %68 {approx = true} : vector<8x1xf32> -> vector<8x1xf32>
    %70 = vector.broadcast %69 : vector<8x1xf32> to vector<8x8xf32>
    %71 = arith.mulf %66, %70 : vector<8x8xf32>
    %72 = math.log %68 : vector<8x1xf32>
    %73 = vector.broadcast %72 : vector<8x1xf32> to vector<8x8xf32>
    %74 = arith.subf %65, %73 : vector<8x8xf32>
    %75 = arith.subf %74, %61 : vector<8x8xf32>
    %76 = arith.mulf %71, %75 : vector<8x8xf32>
    %77 = vector.shape_cast %76 : vector<8x8xf32> to vector<1x8x8xf32>
    %cst_20 = arith.constant dense<0.000000e+00> : vector<1xf32>
    %78 = vector.multi_reduction <add>, %77, %cst_20 [1, 2] : vector<1x8x8xf32> to vector<1xf32>
    %79 = vector.shape_cast %78 : vector<1xf32> to vector<1x1x1xf32>
    %80 = vector.extract %79[0, 0, 0] : f32 from vector<1x1x1xf32>
    %c0_21 = arith.constant 0 : index
    %81 = memref.load %arg5[%c0_21] : memref<3xf32, #tpu.memory_space<smem>>
    %82 = arith.addf %81, %32 : f32
    %c0_22 = arith.constant 0 : index
    %83 = memref.load %arg5[%c0_22] : memref<3xf32, #tpu.memory_space<smem>>
    memref.store %82, %arg5[%c0_22] : memref<3xf32, #tpu.memory_space<smem>>
    %c1 = arith.constant 1 : index
    %84 = memref.load %arg5[%c1] : memref<3xf32, #tpu.memory_space<smem>>
    %85 = arith.addf %84, %47 : f32
    %c1_23 = arith.constant 1 : index
    %86 = memref.load %arg5[%c1_23] : memref<3xf32, #tpu.memory_space<smem>>
    memref.store %85, %arg5[%c1_23] : memref<3xf32, #tpu.memory_space<smem>>
    %c2 = arith.constant 2 : index
    %87 = memref.load %arg5[%c2] : memref<3xf32, #tpu.memory_space<smem>>
    %88 = arith.addf %87, %80 : f32
    %c2_24 = arith.constant 2 : index
    %89 = memref.load %arg5[%c2_24] : memref<3xf32, #tpu.memory_space<smem>>
    memref.store %88, %arg5[%c2_24] : memref<3xf32, #tpu.memory_space<smem>>
    %c0_i32_25 = arith.constant 0 : i32
    %90 = arith.cmpi eq, %arg0, %c0_i32_25 : i32
    %91 = arith.extui %90 : i1 to i32
    %c0_i32_26 = arith.constant 0 : i32
    %92 = arith.cmpi ne, %91, %c0_i32_26 : i32
    scf.if %92 {
      %c0_27 = arith.constant 0 : index
      %93 = memref.load %arg5[%c0_27] : memref<3xf32, #tpu.memory_space<smem>>
      %cst_28 = arith.constant 0.0178571437 : f32
      %94 = arith.mulf %93, %cst_28 : f32
      %c0_29 = arith.constant 0 : index
      %95 = memref.load %arg4[%c0_29] : memref<3xf32, #tpu.memory_space<smem>>
      memref.store %94, %arg4[%c0_29] : memref<3xf32, #tpu.memory_space<smem>>
      %c1_30 = arith.constant 1 : index
      %96 = memref.load %arg5[%c1_30] : memref<3xf32, #tpu.memory_space<smem>>
      %cst_31 = arith.constant 0.0178571437 : f32
      %97 = arith.mulf %96, %cst_31 : f32
      %c1_32 = arith.constant 1 : index
      %98 = memref.load %arg4[%c1_32] : memref<3xf32, #tpu.memory_space<smem>>
      memref.store %97, %arg4[%c1_32] : memref<3xf32, #tpu.memory_space<smem>>
      %c2_33 = arith.constant 2 : index
      %99 = memref.load %arg5[%c2_33] : memref<3xf32, #tpu.memory_space<smem>>
      %cst_34 = arith.constant 1.250000e-01 : f32
      %100 = arith.mulf %99, %cst_34 : f32
      %c2_35 = arith.constant 2 : index
      %101 = memref.load %arg4[%c2_35] : memref<3xf32, #tpu.memory_space<smem>>
      memref.store %100, %arg4[%c2_35] : memref<3xf32, #tpu.memory_space<smem>>
    } else {
    }
    return
  }
  func.func @transform_0(%arg0: i32) -> (i32, i32) {
    %c0_i32 = arith.constant 0 : i32
    %c0_i32_0 = arith.constant 0 : i32
    return %arg0, %c0_i32 : i32, i32
  }
  func.func @transform_1(%arg0: i32) -> (i32, i32) {
    %c0_i32 = arith.constant 0 : i32
    %c0_i32_0 = arith.constant 0 : i32
    return %arg0, %c0_i32 : i32, i32
  }
  func.func @transform_2(%arg0: i32) -> (i32, i32) {
    %c0_i32 = arith.constant 0 : i32
    %c0_i32_0 = arith.constant 0 : i32
    return %arg0, %c0_i32 : i32, i32
  }
  func.func @transform_3(%arg0: i32) -> i32 {
    %c0_i32 = arith.constant 0 : i32
    %c0_i32_0 = arith.constant 0 : i32
    return %c0_i32 : i32
  }
}

</mosaic_0001>

<bundles_post_ra>
// kernel: stml_loss.6
= control target key start
LH: loop header
LB: loop body
LE: loop exit
PB: predicated region body
PF: predicated region fallthrough
CT: control target
= control target key end

     0   :  { %vm59_vm1 = vcmask 64512   ;;  %v86_v21 = vmov 8.0   ;;  %s121_s1 = inlined_call_operand.vmem [shape: f32[8,128], index: 1, kind: input, shape index: {}, may-alias: {0,1}]   ;;  %s122_s0 = inlined_call_operand.vmem [shape: f32[8,128], index: 0, kind: input, shape index: {}, may-alias: {0,1}]   ;;  %s123_s2 = inlined_call_operand.vmem [shape: f32[1,8], index: 2, kind: input, shape index: {}]   ;;  %s124_s3 = inlined_call_operand.vmem [shape: f32[8,8], index: 3, kind: output, shape index: {}]  }
   0x1   :  { %v15_v0 = vld [vmem:[%s121_s1] sm:$0xff] }
   0x2   :  { %v14_v1 = vld [vmem:[%s122_s0] sm:$0xff]  ;;  %31 = vmatpush.xpose.msra.mxu0 %v15_v0 }
   0x3   :  { %v36_v2 = vmul.f32 %v14_v1, %v14_v1  ;;  %v79_v3 = vld [vmem:[%s123_s2] ss:$0 sm:$0xff] }
   0x5   :  { %37 = vadd.xlane.f32.xlu0 %v36_v2  ;;  %32 = vmatmul.f32.vlgmr.msra.gmra.mxu0 %v14_v1 }
  0x78   :  { %v38_v4 = vpop.xlane.xlu0 %37 }
  0x79   :  { %v43_v5 = vadd.f32 %v79_v3, %v38_v4 }
  0x82   :  { %v33_v6 = vpop.f32.mrf.mxu0 }
  0x83   :  { %v44_v7 = vmul.f32 2.0, %v33_v6 }
  0x85   :  { %v45_v8 = vsub.f32 %v43_v5, %v44_v7 }
  0x87   :  { %v46_v9 = vmax.f32 %v45_v8, 0.0 }
  0x89   :  { %80 = vrsqrt.f32 %v46_v9  ;;  %vm54_vm0 = vcmp.eq.f32.partialorder %v46_v9, inf  ;;  %v57_v17 = vand.u32 2147483648, %v46_v9  ;;  %vm56_vm2 = vcmp.eq.f32.partialorder %v46_v9, 0.0 }
  0x8a   :  { %82 = vrcp.f32 %v86_v21 }
  0x8f   :  { %v81_v10 = vpop.eup %80 }
  0x90   :  { %v48_v11 = vmul.f32 %v81_v10, %v46_v9  ;;  %v83_v22 = vpop.eup %82 }
  0x91   :  { %v64_v23 = vmul.f32 8.0, %v83_v22  ;;  %vm68_vm3 = vweird.f32 %v83_v22 }
  0x92   :  { %v49_v12 = vmul.f32 %v81_v10, %v48_v11 }
  0x93   :  { %v65_v24 = vsub.f32 1.0, %v64_v23 }
  0x94   :  { %v50_v13 = vmul.f32 0.5, %v49_v12 }
  0x95   :  { %v66_v25 = vmul.f32 %v83_v22, %v65_v24 }
  0x96   :  { %v51_v14 = vsub.f32 1.5, %v50_v13 }
  0x97   :  { %v67_v26 = vadd.f32 %v83_v22, %v66_v25 }
  0x98   :  { %v52_v15 = vmul.f32 %v81_v10, %v51_v14 }
  0x99   :  { %v69_v27 = vsel %vm68_vm3, %v83_v22, %v67_v26 }
  0x9a   :  { %v53_v16 = vmul.f32 %v52_v15, %v46_v9 }
  0x9c   :  { %v55_v18 = vsel %vm54_vm0, %v46_v9, %v53_v16 }
  0x9d   :  { %v58_v19 = vsel %vm56_vm2, %v57_v17, %v55_v18 }
  0x9e   :  { %v60_v20 = vsel %vm59_vm1, %v58_v19, 0.0 }
  0x9f   :  { %61 = vadd.xlane.f32.xlu0 %v60_v20 }
 0x112   :  { %v62_v28 = vpop.xlane.xlu0 %61 }
 0x113   :  { %v70_v29 = vmul.f32 %v69_v27, %v62_v28 }
 0x115   :  { %84 = vrcp.f32 %v70_v29 }
 0x11b   :  { %v85_v30 = vpop.eup %84 }
 0x11c   :  { %v72_v31 = vmul.f32 %v85_v30, %v58_v19 }
 0x11e   :  { %73 = vst.msk [vmem:[%s124_s3] sm:$0xff] %vm59_vm1, %v72_v31 }

// kernel: stml_loss.9
= control target key start
LH: loop header
LB: loop body
LE: loop exit
PB: predicated region body
PF: predicated region fallthrough
CT: control target
= control target key end

     0   :  { %vm49_vm0 = vcmask 64512   ;;  %s238_s0 = inlined_call_operand.vmem [shape: f32[8,8], index: 0, kind: input, shape index: {}]   ;;  %s239_s1 = inlined_call_operand.vmem [shape: f32[8,8], index: 1, kind: input, shape index: {}]   ;;  %s240_s2 = inlined_call_operand.vmem [shape: f32[8,8], index: 2, kind: input, shape index: {}]   ;;  %s241_s3 = inlined_call_operand.vmem [shape: f32[3], index: 3, kind: output, shape index: {}]  }
   0x1   :  { %v25_v0 = vld [vmem:[%s238_s0] sm:$0xff] }
   0x2   :  { %8 = vsyncpa [#allocation4], 0  ;;  %v78_v1 = vsub.f32 0.0, %v25_v0  ;;  %v26_v2 = vld [vmem:[%s239_s1] sm:$0xff]  ;;  %v28_v16 = vlaneseq  ;;  %v44_v17 = vsub.f32 1.0, %v25_v0  ;;  %v41_v22 = vmax.f32 %v25_v0, 0.0 }
   0x3   :  { %v79_v4 = vsub.f32 0.0, %v26_v2  ;;  %v27_v20 = vld [vmem:[%s240_s2] sm:$0xff]  ;;  %v197_v23 = vmov 0.0   ;;  %v63_v30 = vsub.f32 1.0, %v26_v2  ;;  %v60_v34 = vmax.f32 %v26_v2, 0.0  ;;  %s150_s21 = sshll.u32 %s241_s3, 4  ;;  %s151_s21 = int_to_ptr.vmem [resolvable:$true] %s150_s21 }
   0x4   :  { %v80_v3 = vsel %vm49_vm0, %v78_v1, -inf  ;;  %v29_v18 = vshrl.u32 %v28_v16, 7  ;;  %v34_v19 = vand.u32 127, %v28_v16  ;;  %v39_v21 = vsub.f32 1.0, %v27_v20  ;;  %s198_s24 = smov [#allocation3]  }
   0x5   :  { %81 = vmax.xlane.f32.xlu0 %v80_v3  ;;  %v92_v5 = vsel %vm49_vm0, %v79_v4, -inf  ;;  %v45_v25 = vmax.f32 %v44_v17, 0.0  ;;  %v42_v28 = vmul.f32 %v41_v22, %v41_v22  ;;  %v64_v35 = vmax.f32 %v63_v30, 0.0 }
   0x6   :  { %vm35_vm1 = vcmp.ne.s32.totalorder %v29_v18, %v34_v19  ;;  %v61_v37 = vmul.f32 %v60_v34, %v60_v34 }
   0x7   :  { %v160_v24 = vsel %vm35_vm1, 1.0, %v197_v23  ;;  %v46_v29 = vmul.f32 %v45_v25, %v45_v25  ;;  %v65_v38 = vmul.f32 %v64_v35, %v64_v35 }
   0x8   :  { %v38_v26 = vmul.f32 %v160_v24, %v27_v20  ;;  %v40_v27 = vmul.f32 %v160_v24, %v39_v21 }
   0xa   :  { %v43_v31 = vmul.f32 %v42_v28, %v38_v26  ;;  %v47_v32 = vmul.f32 %v46_v29, %v40_v27  ;;  %v62_v39 = vmul.f32 %v61_v37, %v38_v26  ;;  %v66_v40 = vmul.f32 %v65_v38, %v40_v27 }
   0xc   :  { %v48_v33 = vadd.f32 %v47_v32, %v43_v31  ;;  %v67_v41 = vadd.f32 %v66_v40, %v62_v39 }
   0xd   :  { %93 = vmax.xlane.f32.xlu0 %v92_v5 }
   0xe   :  { %v50_v36 = vsel %vm49_vm0, %v48_v33, 0.0  ;;  %v68_v42 = vsel %vm49_vm0, %v67_v41, 0.0 }
   0xf   :  { %51 = vadd.xlane.f32.xlu2 %v50_v36 }
  0x17   :  { %69 = vadd.xlane.f32.xlu2 %v68_v42 }
  0x78   :  { %v82_v6 = vpop.xlane.xlu0 %81 }
  0x79   :  { %v83_v7 = vsub.f32 %v78_v1, %v82_v6 }
  0x7b   :  { %v84_v8 = vmul.f32 1.442695, %v83_v7 }
  0x7d   :  { %173 = vpow2.f32 %v84_v8 }
  0x80   :  { %v94_v9 = vpop.xlane.xlu0 %93 }
  0x81   :  { %v95_v10 = vsub.f32 %v79_v4, %v94_v9 }
  0x82   :  { %v52_v56 = vpop.xlane.xlu2 %51 }
  0x83   :  { %v174_v11 = vpop.eup %173  ;;  %v96_v12 = vmul.f32 1.442695, %v95_v10  ;;  %v53_v57 = vrot.slane %v52_v56, 4 }
  0x84   :  { %v86_v13 = vsel %vm49_vm0, %v174_v11, 0.0 }
  0x85   :  { %175 = vpow2.f32 %v96_v12  ;;  %87 = vadd.xlane.f32.xlu1 %v86_v13  ;;  %v54_v58 = vadd.f32 %v53_v57, %v52_v56 }
  0x87   :  { %v55_v59 = vrot.slane %v54_v58, 2 }
  0x89   :  { %v56_v60 = vadd.f32 %v55_v59, %v54_v58 }
  0x8a   :  { %v70_v61 = vpop.xlane.xlu2 %69 }
  0x8b   :  { %v176_v14 = vpop.eup %175  ;;  %v71_v62 = vrot.slane %v70_v61, 4  ;;  %v57_v63 = vrot.slane %v56_v60, 1 }
  0x8c   :  { %v98_v15 = vsel %vm49_vm0, %v176_v14, 0.0 }
  0x8d   :  { %99 = vadd.xlane.f32.xlu1 %v98_v15  ;;  %v72_v0 = vadd.f32 %v71_v62, %v70_v61  ;;  %v58_v1 = vadd.f32 %v57_v63, %v56_v60 }
  0x8f   :  { %v73_v2 = vrot.slane %v72_v0, 2  ;;  %165 = vpush %v58_v1 }
  0x91   :  { %v74_v3 = vadd.f32 %v73_v2, %v72_v0 }
  0x93   :  { %v75_v4 = vrot.slane %v74_v3, 1 }
  0x95   :  { %v76_v5 = vadd.f32 %v75_v4, %v74_v3 }
  0x97   :  { %167 = vpush %v76_v5 }
  0xc0   :  { %s166_s2 = spop %165 }
  0xc1   :  { %s134_s16 = smul.f32 0.017857144, %s166_s2 }
  0xc3   :  { %136 = sst [smem:[#allocation3]] %s134_s16 }
  0xc8   :  { %s168_s17 = spop %167 }
  0xc9   :  { %s138_s18 = smul.f32 0.017857144, %s168_s17 }
  0xcb   :  { %140 = sst [smem:[#allocation3 + $0x1]] %s138_s18 }
  0xf8   :  { %v88_v43 = vpop.xlane.xlu1 %87 }
  0xf9   :  { %177 = vlog2.f32 %v88_v43 }
  0xff   :  { %v178_v45 = vpop.eup %177 }
 0x100   :  { %v100_v44 = vpop.xlane.xlu1 %99  ;;  %v90_v46 = vmul.f32 0.6931472, %v178_v45 }
 0x101   :  { %179 = vlog2.f32 %v100_v44 }
 0x102   :  { %181 = vrcp.f32 %v100_v44  ;;  %v91_v50 = vsub.f32 %v83_v7, %v90_v46 }
 0x107   :  { %v180_v47 = vpop.eup %179 }
 0x108   :  { %v104_v48 = vmul.f32 0.6931472, %v180_v47  ;;  %v182_v49 = vpop.eup %181 }
 0x109   :  { %v102_v52 = vmul.f32 %v182_v49, %v176_v14 }
 0x10a   :  { %v105_v51 = vsub.f32 %v95_v10, %v104_v48 }
 0x10c   :  { %v106_v53 = vsub.f32 %v105_v51, %v91_v50 }
 0x10e   :  { %v107_v54 = vmul.f32 %v106_v53, %v102_v52 }
 0x110   :  { %v108_v55 = vsel %vm49_vm0, %v107_v54, 0.0 }
 0x111   :  { %109 = vadd.xlane.f32.xlu0 %v108_v55 }
 0x184   :  { %v110_v6 = vpop.xlane.xlu0 %109 }
 0x185   :  { %v111_v7 = vrot.slane %v110_v6, 4 }
 0x187   :  { %v112_v8 = vadd.f32 %v111_v7, %v110_v6 }
 0x189   :  { %v113_v9 = vrot.slane %v112_v8, 2 }
 0x18b   :  { %v114_v10 = vadd.f32 %v113_v9, %v112_v8 }
 0x18d   :  { %v115_v11 = vrot.slane %v114_v10, 1 }
 0x18f   :  { %v116_v12 = vadd.f32 %v115_v11, %v114_v10 }
 0x191   :  { %169 = vpush %v116_v12 }
 0x1c2   :  { %s170_s22 = spop %169 }
 0x1c3   :  { %s142_s23 = smul.f32 0.125, %s170_s22 }
 0x1c5   :  { %144 = sst [smem:[#allocation3 + $0x2]] %s142_s23 }
 0x1c6   :  { %153 = dma.smem_to_vmem %s198_s24, 16, %s151_s21, [#allocation4]  }
 0x1c7   :  { %195 = dma.done.wait [#allocation4], 16  }
 0x1c8   :  { %196 = vsyncadd [#allocation4], 4294967280 }
 0x1c9   :  { %158 = sfence }
 0x1ca   :  { %159 = vsyncpa [#allocation4], 1 }

// kernel: stml_loss.8
= control target key start
LH: loop header
LB: loop body
LE: loop exit
PB: predicated region body
PF: predicated region fallthrough
CT: control target
= control target key end

     0   :  { %vm13_vm0 = vcmask 64512   ;;  %s85_s1 = inlined_call_operand.vmem [shape: f32[8,8], index: 1, kind: input, shape index: {}, may-alias: {0,1}]   ;;  %s86_s0 = inlined_call_operand.vmem [shape: f32[8,8], index: 0, kind: input, shape index: {}, may-alias: {0,1}]   ;;  %s87_s2 = inlined_call_operand.vmem [shape: f32[8,8], index: 2, kind: output, shape index: {}]  }
   0x1   :  { %v12_v0 = vld [vmem:[%s85_s1] sm:$0xff] }
   0x2   :  { %v11_v1 = vld [vmem:[%s86_s0] sm:$0xff]  ;;  %53 = vmatpush.xpose.msk.msra.mxu0 %vm13_vm0, %v12_v0 }
   0x3   :  { %v40_v2 = vsel %vm13_vm0, %v11_v1, 0.0  ;;  %vm45_vm1 = vcmp.ne.f32.partialorder %v11_v1, 0.0 }
   0x4   :  { %41 = vadd.xlane.f32.xlu0 %v40_v2 }
   0x5   :  { %54 = vmatmul.msk.f32.vlgmr.msra.gmra.mxu0 %vm13_vm0, %v11_v1 }
  0x77   :  { %v42_v3 = vpop.xlane.xlu0 %41 }
  0x78   :  { %v43_v4 = vmax.f32 %v42_v3, 1.0 }
  0x7a   :  { %55 = vrcp.f32 %v43_v4 }
  0x80   :  { %v56_v5 = vpop.eup %55 }
  0x82   :  { %v37_v6 = vpop.f32.mrf.mxu0 }
  0x83   :  { %v46_v7 = vmul.f32 %v56_v5, %v37_v6 }
  0x85   :  { %v47_v8 = vsel %vm45_vm1, %v46_v7, 0.0 }
  0x86   :  { %48 = vst.msk [vmem:[%s87_s2] sm:$0xff] %vm13_vm0, %v47_v8 }

// kernel: stml_loss.7
= control target key start
LH: loop header
LB: loop body
LE: loop exit
PB: predicated region body
PF: predicated region fallthrough
CT: control target
= control target key end

     0   :  { %vm50_vm0 = vcmask 64512   ;;  %s91_s1 = inlined_call_operand.vmem [shape: f32[8,128], index: 1, kind: input, shape index: {}, may-alias: {0,1}]   ;;  %s92_s0 = inlined_call_operand.vmem [shape: f32[8,128], index: 0, kind: input, shape index: {}, may-alias: {0,1}]   ;;  %s93_s2 = inlined_call_operand.vmem [shape: f32[1,8], index: 2, kind: input, shape index: {}]   ;;  %s94_s3 = inlined_call_operand.vmem [shape: f32[8,8], index: 3, kind: output, shape index: {}]  }
   0x1   :  { %v15_v0 = vld [vmem:[%s91_s1] sm:$0xff] }
   0x2   :  { %v14_v1 = vld [vmem:[%s92_s0] sm:$0xff]  ;;  %31 = vmatpush.xpose.msra.mxu0 %v15_v0 }
   0x3   :  { %v36_v2 = vmul.f32 %v14_v1, %v14_v1  ;;  %v56_v3 = vld [vmem:[%s93_s2] ss:$0 sm:$0xff] }
   0x5   :  { %37 = vadd.xlane.f32.xlu0 %v36_v2  ;;  %32 = vmatmul.f32.vlgmr.msra.gmra.mxu0 %v14_v1 }
  0x78   :  { %v38_v4 = vpop.xlane.xlu0 %37 }
  0x79   :  { %v43_v5 = vadd.f32 %v56_v3, %v38_v4 }
  0x82   :  { %v33_v6 = vpop.f32.mrf.mxu0 }
  0x83   :  { %v44_v7 = vmul.f32 2.0, %v33_v6 }
  0x85   :  { %v45_v8 = vsub.f32 %v43_v5, %v44_v7 }
  0x87   :  { %v46_v9 = vmax.f32 %v45_v8, 0.0 }
  0x89   :  { %v47_v10 = vsub.f32 0.0, %v46_v9 }
  0x8b   :  { %v48_v11 = vmul.f32 1.442695, %v47_v10 }
  0x8d   :  { %57 = vpow2.f32 %v48_v11 }
  0x93   :  { %v58_v12 = vpop.eup %57 }
  0x94   :  { %51 = vst.msk [vmem:[%s94_s3] sm:$0xff] %vm50_vm0, %v58_v12 }

</bundles_post_ra>
